<compile_context>
chip_gen: v7x
topology: tpu7x:2x2x1
jax: 0.10.0
libtpu: 0.0.40
codegen_flags: <defaults>
</compile_context>

<pallas_src>
import time

import jax
import jax.numpy as jnp
from jax import lax
from jax.experimental import pallas as pl
from jax.experimental.pallas import tpu as pltpu

PATCH = 4
EMB_DIM = 32


def time_wrapper(func):
    def _func(*args, **kwargs):
        start_time = time.time()
        out = func(*args, **kwargs)
        jax.block_until_ready(out)  # measure device time, not async dispatch
        end_time = time.time()
        return end_time - start_time
    return _func


# ---------------------------------------------------------------------------
# Pallas kernels
# ---------------------------------------------------------------------------
def _embed_kernel(x_ref, w_ref, b_ref, o_ref):
    # x: [N, F], w: [F, D], b: [1, D]  ->  o: [N, D] (L2-normalized rows)
    # NOTE: add precision=lax.Precision.HIGHEST if bit-faithful parity with
    # torch.matmul f32 is required.
    z = jnp.dot(x_ref[...], w_ref[...], preferred_element_type=jnp.float32)
    z = z + b_ref[...]
    inv_norm = lax.rsqrt(jnp.sum(z * z, axis=-1, keepdims=True) + 1e-12)
    o_ref[...] = z * inv_norm


def _fused_embed_sim_kernel(x_ref, w_ref, b_ref, sim_ref):
    # Fused baseline path, single launch:
    #   x: [2N, F] stacked patches (rows 0..N-1 -> image0, rows N..2N-1 -> image1)
    #   w: [F, D], b: [1, D]
    #   sim = L2norm(x0 @ w + b)[-1] @ L2norm(x1 @ w + b)^T   -> [1, N]
    z = jnp.dot(x_ref[...], w_ref[...], preferred_element_type=jnp.float32)
    z = z + b_ref[...]
    inv_norm = lax.rsqrt(jnp.sum(z * z, axis=-1, keepdims=True) + 1e-12)
    emb = z * inv_norm                      # [2N, D] — stays on-chip, no HBM trip
    n = emb.shape[0] // 2
    q = emb[n - 1:n, :]                     # last detection of image 0, [1, D]
    g = emb[n:, :]                          # image 1 embeddings, [N, D]
    # q @ g^T without materializing the transpose: contract the last dims.
    sim_ref[...] = lax.dot_general(
        q, g,
        dimension_numbers=(((1,), (1,)), ((), ())),
        preferred_element_type=jnp.float32)


def embed_pallas(x, w, b):
    n, f = x.shape
    d = w.shape[1]
    return pl.pallas_call(
        _embed_kernel,
        out_shape=jax.ShapeDtypeStruct((n, d), jnp.float32),
        grid=(1,),
        in_specs=[
            pl.BlockSpec((n, f), lambda i: (0, 0)),
            pl.BlockSpec((f, d), lambda i: (0, 0)),
            pl.BlockSpec((1, d), lambda i: (0, 0)),
        ],
        out_specs=pl.BlockSpec((n, d), lambda i: (0, 0)),
        compiler_params=pltpu.CompilerParams(
            dimension_semantics=("arbitrary",)),
    )(x, w, b.reshape(1, d))


def fused_embed_sim_pallas(x_stacked, w, b):
    n2, f = x_stacked.shape
    d = w.shape[1]
    n = n2 // 2
    return pl.pallas_call(
        _fused_embed_sim_kernel,
        out_shape=jax.ShapeDtypeStruct((1, n), jnp.float32),
        grid=(1,),
        in_specs=[
            pl.BlockSpec((n2, f), lambda i: (0, 0)),
            pl.BlockSpec((f, d), lambda i: (0, 0)),
            pl.BlockSpec((1, d), lambda i: (0, 0)),
        ],
        out_specs=pl.BlockSpec((1, n), lambda i: (0, 0)),
        compiler_params=pltpu.CompilerParams(
            dimension_semantics=("arbitrary",)),
    )(x_stacked, w, b.reshape(1, d))


# ---------------------------------------------------------------------------
# Glue (plain JAX) + jitted compute paths
# ---------------------------------------------------------------------------
def _extract_patches(img):
    # img: [1, C, H, W] -> [num_patches, C*PATCH*PATCH]
    _, c, h, w = img.shape
    x = img[0].reshape(c, h // PATCH, PATCH, w // PATCH, PATCH)
    x = jnp.transpose(x, (1, 3, 0, 2, 4))  # [H/p, W/p, C, p, p]
    return x.reshape((h // PATCH) * (w // PATCH), c * PATCH * PATCH)


@jax.jit
def _feat_compute(img, w, b):
    # One image -> L2-normalized embeddings (single Pallas launch, jitted).
    return embed_pallas(_extract_patches(img), w, b)


@jax.jit
def _baseline_compute(img0, img1, w, b):
    # Both images batched into one [2N, F] matrix -> single fused Pallas launch.
    p0 = _extract_patches(img0)
    p1 = _extract_patches(img1)
    x = jnp.concatenate([p0, p1], axis=0)
    return fused_embed_sim_pallas(x, w, b)[0]   # [N]


# ---------------------------------------------------------------------------
# Synthetic detector `net` (deterministic parameters)
# ---------------------------------------------------------------------------
class SyntheticNet:
    """Stand-in for the detection network: each spatial patch is a 'detection'
    whose embedding = L2norm(patch_feat @ W + b), computed in a Pallas kernel."""

    def __init__(self, in_ch, key):
        feat_dim = in_ch * PATCH * PATCH
        kw, kb = jax.random.split(key)
        self.w = (jax.random.normal(kw, (feat_dim, EMB_DIM), jnp.float32)
                  / jnp.sqrt(jnp.float32(feat_dim)))
        self.b = 0.01 * jax.random.normal(kb, (EMB_DIM,), jnp.float32)

    def __call__(self, images):
        detections = [{"embeddings": _feat_compute(img, self.w, self.b)}
                      for img in images]
        return detections, None


# ---------------------------------------------------------------------------
# SpeedForward (JAX/Pallas version)
# ---------------------------------------------------------------------------
class SpeedForward:
    def __init__(self, net, graph_head=None, mode="feat"):
        self.funcs = {
            "feat": self.feat_forward,
            "baseline": self.baseline_forward,
            "cmm": self.cmm_forward,
            "acae": self.graph_forward,
        }
        self.net = net
        self.graph_head = graph_head
        self.set_mode(mode)

    def set_mode(self, mode):
        assert mode in self.funcs
        self.mode = mode
        self.func_forward = self.funcs[mode]
        self.time_func = time_wrapper(self.func_forward)

    def feat_forward(self, images):
        detections, _ = self.net(images)
        return detections

    def baseline_forward(self, images):
        # Fused path: identical result to `net(images)` followed by
        # embeddings[0][-1] @ embeddings[1].T, but a single jitted Pallas
        # launch (embeddings never leave on-chip memory).
        sim = _baseline_compute(images[0], images[1], self.net.w, self.net.b)
        return sim

    def cmm_forward(self, images):
        # TODO(synk): get_context_sim (CMM graph matching) has no provided source; not translated.
        raise NotImplementedError

    def graph_forward(self, images):
        # TODO(synk): graph_head.inference (ACAE) has no provided source; not translated.
        raise NotImplementedError

    def __call__(self, images):
        if self.mode == "feat":
            images = [images[0]]
        else:
            assert len(images) % 2 == 0, f"{len(images)} should be even number."
        # Warm-up (compile + first dispatch) outside the timed region so the
        # measured time is kernel/dispatch time, not tracing/compilation.
        jax.block_until_ready(self.func_forward(images))
        inf_time = self.time_func(images)
        return inf_time


# ---------------------------------------------------------------------------
if __name__ == "__main__":
    key = jax.random.PRNGKey(0)
    k_net, k_img0, k_img1 = jax.random.split(key, 3)

    B, C, H, W = 1, 4, 16, 16  # NCHW, one "image" per list entry
    images = [
        jax.random.normal(k_img0, (B, C, H, W), jnp.float32),
        jax.random.normal(k_img1, (B, C, H, W), jnp.float32),
    ]

    net = SyntheticNet(in_ch=C, key=k_net)
    speed = SpeedForward(net, graph_head=None, mode="baseline")

    n_det = (H // PATCH) * (W // PATCH)

    # Run the fused hot path once and block on the result.
    sim = speed.baseline_forward(images)
    jax.block_until_ready(sim)
    assert sim.shape == (n_det,)

    # Cross-check the fused kernel against the unfused reference path
    # (per-image embed kernel + host-side matmul).
    detections, _ = net(images)
    q = detections[0]["embeddings"][-1][None, :]
    g = detections[1]["embeddings"]
    ref_sim = jnp.matmul(q, g.T, precision=lax.Precision.HIGHEST)[0]
    assert jnp.allclose(sim, ref_sim, atol=1e-3, rtol=1e-3)

    # Reproduce the module's forward() semantics (returns inference time),
    # with warm-up done inside __call__.
    inf_time = speed(images)
    assert inf_time >= 0.0

    print("KERNEL_OK")
</pallas_src>

<mosaic_0001>
module attributes {stable_mosaic.version = 11 : i64} {
  func.func @_fused_embed_sim_kernel(%arg0: i32, %arg1: memref<32x64xf32, #tpu.memory_space<vmem>>, %arg2: memref<64x32xf32, #tpu.memory_space<vmem>>, %arg3: memref<1x32xf32, #tpu.memory_space<vmem>>, %arg4: memref<1x16xf32, #tpu.memory_space<vmem>>) attributes {dimension_semantics = [#tpu.dimension_semantics<arbitrary>], iteration_bounds = array<i64: 1>, scalar_prefetch = 0 : i64, scratch_operands = 0 : i64, tpu.core_type = #tpu.core_type<tc>, window_params = [{pipeline_mode = #tpu.pipeline_mode<synchronous>, transform_indices = @transform_0, window_bounds = array<i64: 32, 64>}, {pipeline_mode = #tpu.pipeline_mode<synchronous>, transform_indices = @transform_1, window_bounds = array<i64: 64, 32>}, {pipeline_mode = #tpu.pipeline_mode<synchronous>, transform_indices = @transform_2, window_bounds = array<i64: 1, 32>}, {pipeline_mode = #tpu.pipeline_mode<synchronous>, transform_indices = @transform_3, window_bounds = array<i64: 1, 16>}]} {
    %c0 = arith.constant 0 : index
    %c0_0 = arith.constant 0 : index
    %0 = vector.load %arg1[%c0, %c0_0] : memref<32x64xf32, #tpu.memory_space<vmem>>, vector<32x64xf32>
    %c0_1 = arith.constant 0 : index
    %c0_2 = arith.constant 0 : index
    %1 = vector.load %arg2[%c0_1, %c0_2] : memref<64x32xf32, #tpu.memory_space<vmem>>, vector<64x32xf32>
    %cst = arith.constant dense<0.000000e+00> : vector<32x32xf32>
    %2 = tpu.matmul %0, %1, %cst {dimension_numbers = #tpu.dot_dimension_numbers<[1], [0], [0], [1], [0, 0, 1, 1], [], []>} : vector<32x64xf32>, vector<64x32xf32>, vector<32x32xf32> -> vector<32x32xf32>
    %c0_3 = arith.constant 0 : index
    %c0_4 = arith.constant 0 : index
    %3 = vector.load %arg3[%c0_3, %c0_4] : memref<1x32xf32, #tpu.memory_space<vmem>>, vector<1x32xf32>
    %4 = vector.broadcast %3 : vector<1x32xf32> to vector<32x32xf32>
    %5 = arith.addf %2, %4 : vector<32x32xf32>
    %6 = arith.mulf %5, %5 : vector<32x32xf32>
    %cst_5 = arith.constant dense<0.000000e+00> : vector<32xf32>
    %7 = vector.multi_reduction <add>, %6, %cst_5 [1] : vector<32x32xf32> to vector<32xf32>
    %8 = vector.shape_cast %7 : vector<32xf32> to vector<32x1xf32>
    %cst_6 = arith.constant 9.99999996E-13 : f32
    %9 = vector.broadcast %cst_6 : f32 to vector<32x1xf32>
    %10 = arith.addf %8, %9 : vector<32x1xf32>
    %11 = math.rsqrt %10 : vector<32x1xf32>
    %12 = vector.broadcast %11 : vector<32x1xf32> to vector<32x32xf32>
    %13 = arith.mulf %5, %12 : vector<32x32xf32>
    %14 = vector.extract_strided_slice %13 {offsets = [15, 0], sizes = [1, 32], strides = [1, 1]} : vector<32x32xf32> to vector<1x32xf32>
    %15 = vector.extract_strided_slice %13 {offsets = [16, 0], sizes = [16, 32], strides = [1, 1]} : vector<32x32xf32> to vector<16x32xf32>
    %cst_7 = arith.constant dense<0.000000e+00> : vector<1x16xf32>
    %16 = tpu.matmul %14, %15, %cst_7 {dimension_numbers = #tpu.dot_dimension_numbers<[1], [1], [0], [0], [0, 0, 1, 0], [], []>} : vector<1x32xf32>, vector<16x32xf32>, vector<1x16xf32> -> vector<1x16xf32>
    %c0_8 = arith.constant 0 : index
    %c0_9 = arith.constant 0 : index
    %17 = vector.load %arg4[%c0_8, %c0_9] : memref<1x16xf32, #tpu.memory_space<vmem>>, vector<1x16xf32>
    tpu.vector_store %arg4[%c0_8, %c0_9], %16 {strides = array<i32>} : memref<1x16xf32, #tpu.memory_space<vmem>>, vector<1x16xf32>,
    return
  }
  func.func @transform_0(%arg0: i32) -> (i32, i32) {
    %c0_i32 = arith.constant 0 : i32
    %c0_i32_0 = arith.constant 0 : i32
    %c0_i32_1 = arith.constant 0 : i32
    return %c0_i32, %c0_i32_0 : i32, i32
  }
  func.func @transform_1(%arg0: i32) -> (i32, i32) {
    %c0_i32 = arith.constant 0 : i32
    %c0_i32_0 = arith.constant 0 : i32
    %c0_i32_1 = arith.constant 0 : i32
    return %c0_i32, %c0_i32_0 : i32, i32
  }
  func.func @transform_2(%arg0: i32) -> (i32, i32) {
    %c0_i32 = arith.constant 0 : i32
    %c0_i32_0 = arith.constant 0 : i32
    %c0_i32_1 = arith.constant 0 : i32
    return %c0_i32, %c0_i32_0 : i32, i32
  }
  func.func @transform_3(%arg0: i32) -> (i32, i32) {
    %c0_i32 = arith.constant 0 : i32
    %c0_i32_0 = arith.constant 0 : i32
    %c0_i32_1 = arith.constant 0 : i32
    return %c0_i32, %c0_i32_0 : i32, i32
  }
}

</mosaic_0001>

<bundles_post_ra>
// kernel: squeeze.4
= control target key start
LH: loop header
LB: loop body
LE: loop exit
PB: predicated region body
PF: predicated region fallthrough
CT: control target
= control target key end

     0   :  { %vm3_vm0 = vcmask 31744   ;;  %s807_s12 = smov 124   ;;  %s809_s23 = smov 116   ;;  %s1100_s0 = inlined_call_operand.vmem [shape: f32[1,4,16,16], index: 0, kind: input, shape index: {}]   ;;  %s1101_s1 = inlined_call_operand.vmem [shape: f32[4,4,4,4,4], index: 1, kind: output, shape index: {}]  }
   0x1   :  { %v721_v0 = vld [vmem:[%s1100_s0 + $0x10] sm:$0xff]   ;;  %v55_v1 = vld [vmem:[%s1100_s0] sm:$0xff]   ;;  %v722_v2 = vld [vmem:[%s1100_s0 + $0x18] sm:$0xff]  }
   0x2   :  { %74 = vrot.lane.b32.xlu1 %v721_v0, %s807_s12  ;;  %56 = vrot.lane.b32.xlu0 %v55_v1, %s807_s12  ;;  %v720_v3 = vld [vmem:[%s1100_s0 + $0x8] sm:$0xff]   ;;  %17 = vst.msk [vmem:[#allocation0 + $0x80] ss:$8 sm:$0xf] %vm3_vm0, %v721_v0   ;;  %v723_v5 = vld [vmem:[%s1100_s0 + $0x20] sm:$0xff]  }
   0x3   :  { %v724_v4 = vld [vmem:[%s1100_s0 + $0x28] sm:$0xff]   ;;  %19 = vst.msk [vmem:[#allocation0 + $0x80] ss:$8 sm:$0xf0] %vm3_vm0, %v721_v0   ;;  %v726_v6 = vld [vmem:[%s1100_s0 + $0x38] sm:$0xff]   ;;  %v725_v7 = vld [vmem:[%s1100_s0 + $0x30] sm:$0xff]  }
   0x4   :  { %4 = vst.msk [vmem:[#allocation0] ss:$8 sm:$0xf] %vm3_vm0, %v55_v1   ;;  %5 = vst.msk [vmem:[#allocation0] ss:$8 sm:$0xf0] %vm3_vm0, %v55_v1  }
   0x5   :  { %24 = vst.msk [vmem:[#allocation0 + $0xc0] ss:$8 sm:$0xf] %vm3_vm0, %v722_v2   ;;  %26 = vst.msk [vmem:[#allocation0 + $0xc0] ss:$8 sm:$0xf0] %vm3_vm0, %v722_v2  }
   0x6   :  { %10 = vst.msk [vmem:[#allocation0 + $0x40] ss:$8 sm:$0xf] %vm3_vm0, %v720_v3   ;;  %12 = vst.msk [vmem:[#allocation0 + $0x40] ss:$8 sm:$0xf0] %vm3_vm0, %v720_v3   ;;  %83 = vrot.lane.b32.xlu1 %v722_v2, %s807_s12  ;;  %65 = vrot.lane.b32.xlu0 %v720_v3, %s807_s12 }
   0x7   :  { %38 = vst.msk [vmem:[#allocation0 + $0x140] ss:$8 sm:$0xf] %vm3_vm0, %v724_v4   ;;  %40 = vst.msk [vmem:[#allocation0 + $0x140] ss:$8 sm:$0xf0] %vm3_vm0, %v724_v4  }
   0x8   :  { %31 = vst.msk [vmem:[#allocation0 + $0x100] ss:$8 sm:$0xf] %vm3_vm0, %v723_v5   ;;  %33 = vst.msk [vmem:[#allocation0 + $0x100] ss:$8 sm:$0xf0] %vm3_vm0, %v723_v5  }
   0x9   :  { %52 = vst.msk [vmem:[#allocation0 + $0x1c0] ss:$8 sm:$0xf] %vm3_vm0, %v726_v6   ;;  %54 = vst.msk [vmem:[#allocation0 + $0x1c0] ss:$8 sm:$0xf0] %vm3_vm0, %v726_v6  }
   0xa   :  { %45 = vst.msk [vmem:[#allocation0 + $0x180] ss:$8 sm:$0xf] %vm3_vm0, %v725_v7   ;;  %47 = vst.msk [vmem:[#allocation0 + $0x180] ss:$8 sm:$0xf0] %vm3_vm0, %v725_v7   ;;  %101 = vrot.lane.b32.xlu1 %v724_v4, %s807_s12  ;;  %92 = vrot.lane.b32.xlu0 %v723_v5, %s807_s12 }
   0xb   :  { %s808_s0 = smov 120  }
   0xe   :  { %119 = vrot.lane.b32.xlu1 %v726_v6, %s807_s12  ;;  %110 = vrot.lane.b32.xlu0 %v725_v7, %s807_s12 }
  0x12   :  { %136 = vrot.lane.b32.xlu1 %v720_v3, %s808_s0  ;;  %127 = vrot.lane.b32.xlu0 %v55_v1, %s808_s0 }
  0x16   :  { %154 = vrot.lane.b32.xlu1 %v722_v2, %s808_s0  ;;  %145 = vrot.lane.b32.xlu0 %v721_v0, %s808_s0 }
  0x1a   :  { %172 = vrot.lane.b32.xlu1 %v724_v4, %s808_s0  ;;  %163 = vrot.lane.b32.xlu0 %v723_v5, %s808_s0 }
  0x1e   :  { %190 = vrot.lane.b32.xlu1 %v726_v6, %s808_s0  ;;  %181 = vrot.lane.b32.xlu0 %v725_v7, %s808_s0 }
  0x22   :  { %207 = vrot.lane.b32.xlu1 %v720_v3, %s809_s23  ;;  %198 = vrot.lane.b32.xlu0 %v55_v1, %s809_s23 }
  0x26   :  { %225 = vrot.lane.b32.xlu1 %v722_v2, %s809_s23  ;;  %216 = vrot.lane.b32.xlu0 %v721_v0, %s809_s23 }
  0x2a   :  { %243 = vrot.lane.b32.xlu1 %v724_v4, %s809_s23  ;;  %234 = vrot.lane.b32.xlu0 %v723_v5, %s809_s23 }
  0x2e   :  { %261 = vrot.lane.b32.xlu1 %v726_v6, %s809_s23  ;;  %252 = vrot.lane.b32.xlu0 %v725_v7, %s809_s23 }
  0x74   :  { %v75_v8 = vpop.permute.xlu1 %74   ;;  %v57_v9 = vpop.permute.xlu0 %56  }
  0x75   :  { %78 = vst.msk [vmem:[#allocation0 + $0x81] ss:$8 sm:$0xf] %vm3_vm0, %v75_v8   ;;  %80 = vst.msk [vmem:[#allocation0 + $0x81] ss:$8 sm:$0xf0] %vm3_vm0, %v75_v8  }
  0x76   :  { %60 = vst.msk [vmem:[#allocation0 + $0x1] ss:$8 sm:$0xf] %vm3_vm0, %v57_v9   ;;  %62 = vst.msk [vmem:[#allocation0 + $0x1] ss:$8 sm:$0xf0] %vm3_vm0, %v57_v9  }
  0x78   :  { %v84_v10 = vpop.permute.xlu1 %83   ;;  %v66_v11 = vpop.permute.xlu0 %65  }
  0x79   :  { %87 = vst.msk [vmem:[#allocation0 + $0xc1] ss:$8 sm:$0xf] %vm3_vm0, %v84_v10   ;;  %89 = vst.msk [vmem:[#allocation0 + $0xc1] ss:$8 sm:$0xf0] %vm3_vm0, %v84_v10  }
  0x7a   :  { %69 = vst.msk [vmem:[#allocation0 + $0x41] ss:$8 sm:$0xf] %vm3_vm0, %v66_v11   ;;  %71 = vst.msk [vmem:[#allocation0 + $0x41] ss:$8 sm:$0xf0] %vm3_vm0, %v66_v11  }
  0x7c   :  { %v102_v12 = vpop.permute.xlu1 %101   ;;  %v93_v13 = vpop.permute.xlu0 %92  }
  0x7d   :  { %105 = vst.msk [vmem:[#allocation0 + $0x141] ss:$8 sm:$0xf] %vm3_vm0, %v102_v12   ;;  %107 = vst.msk [vmem:[#allocation0 + $0x141] ss:$8 sm:$0xf0] %vm3_vm0, %v102_v12  }
  0x7e   :  { %96 = vst.msk [vmem:[#allocation0 + $0x101] ss:$8 sm:$0xf] %vm3_vm0, %v93_v13   ;;  %98 = vst.msk [vmem:[#allocation0 + $0x101] ss:$8 sm:$0xf0] %vm3_vm0, %v93_v13  }
  0x80   :  { %v120_v14 = vpop.permute.xlu1 %119   ;;  %v111_v15 = vpop.permute.xlu0 %110  }
  0x81   :  { %123 = vst.msk [vmem:[#allocation0 + $0x1c1] ss:$8 sm:$0xf] %vm3_vm0, %v120_v14   ;;  %125 = vst.msk [vmem:[#allocation0 + $0x1c1] ss:$8 sm:$0xf0] %vm3_vm0, %v120_v14  }
  0x82   :  { %114 = vst.msk [vmem:[#allocation0 + $0x181] ss:$8 sm:$0xf] %vm3_vm0, %v111_v15   ;;  %116 = vst.msk [vmem:[#allocation0 + $0x181] ss:$8 sm:$0xf0] %vm3_vm0, %v111_v15  }
  0x84   :  { %v137_v16 = vpop.permute.xlu1 %136   ;;  %v128_v17 = vpop.permute.xlu0 %127  }
  0x85   :  { %140 = vst.msk [vmem:[#allocation0 + $0x42] ss:$8 sm:$0xf] %vm3_vm0, %v137_v16   ;;  %142 = vst.msk [vmem:[#allocation0 + $0x42] ss:$8 sm:$0xf0] %vm3_vm0, %v137_v16  }
  0x86   :  { %131 = vst.msk [vmem:[#allocation0 + $0x2] ss:$8 sm:$0xf] %vm3_vm0, %v128_v17   ;;  %133 = vst.msk [vmem:[#allocation0 + $0x2] ss:$8 sm:$0xf0] %vm3_vm0, %v128_v17  }
  0x88   :  { %v155_v18 = vpop.permute.xlu1 %154   ;;  %v146_v19 = vpop.permute.xlu0 %145  }
  0x89   :  { %158 = vst.msk [vmem:[#allocation0 + $0xc2] ss:$8 sm:$0xf] %vm3_vm0, %v155_v18   ;;  %160 = vst.msk [vmem:[#allocation0 + $0xc2] ss:$8 sm:$0xf0] %vm3_vm0, %v155_v18  }
  0x8a   :  { %149 = vst.msk [vmem:[#allocation0 + $0x82] ss:$8 sm:$0xf] %vm3_vm0, %v146_v19   ;;  %151 = vst.msk [vmem:[#allocation0 + $0x82] ss:$8 sm:$0xf0] %vm3_vm0, %v146_v19  }
  0x8c   :  { %v173_v20 = vpop.permute.xlu1 %172   ;;  %v164_v21 = vpop.permute.xlu0 %163  }
  0x8d   :  { %176 = vst.msk [vmem:[#allocation0 + $0x142] ss:$8 sm:$0xf] %vm3_vm0, %v173_v20   ;;  %178 = vst.msk [vmem:[#allocation0 + $0x142] ss:$8 sm:$0xf0] %vm3_vm0, %v173_v20  }
  0x8e   :  { %167 = vst.msk [vmem:[#allocation0 + $0x102] ss:$8 sm:$0xf] %vm3_vm0, %v164_v21   ;;  %169 = vst.msk [vmem:[#allocation0 + $0x102] ss:$8 sm:$0xf0] %vm3_vm0, %v164_v21  }
  0x90   :  { %v191_v22 = vpop.permute.xlu1 %190   ;;  %v182_v23 = vpop.permute.xlu0 %181  }
  0x91   :  { %194 = vst.msk [vmem:[#allocation0 + $0x1c2] ss:$8 sm:$0xf] %vm3_vm0, %v191_v22   ;;  %196 = vst.msk [vmem:[#allocation0 + $0x1c2] ss:$8 sm:$0xf0] %vm3_vm0, %v191_v22  }
  0x92   :  { %185 = vst.msk [vmem:[#allocation0 + $0x182] ss:$8 sm:$0xf] %vm3_vm0, %v182_v23   ;;  %187 = vst.msk [vmem:[#allocation0 + $0x182] ss:$8 sm:$0xf0] %vm3_vm0, %v182_v23  }
  0x94   :  { %v208_v24 = vpop.permute.xlu1 %207   ;;  %v199_v25 = vpop.permute.xlu0 %198  }
  0x95   :  { %211 = vst.msk [vmem:[#allocation0 + $0x43] ss:$8 sm:$0xf] %vm3_vm0, %v208_v24   ;;  %213 = vst.msk [vmem:[#allocation0 + $0x43] ss:$8 sm:$0xf0] %vm3_vm0, %v208_v24  }
  0x96   :  { %202 = vst.msk [vmem:[#allocation0 + $0x3] ss:$8 sm:$0xf] %vm3_vm0, %v199_v25   ;;  %204 = vst.msk [vmem:[#allocation0 + $0x3] ss:$8 sm:$0xf0] %vm3_vm0, %v199_v25  }
  0x98   :  { %v226_v26 = vpop.permute.xlu1 %225   ;;  %v217_v27 = vpop.permute.xlu0 %216  }
  0x99   :  { %229 = vst.msk [vmem:[#allocation0 + $0xc3] ss:$8 sm:$0xf] %vm3_vm0, %v226_v26   ;;  %231 = vst.msk [vmem:[#allocation0 + $0xc3] ss:$8 sm:$0xf0] %vm3_vm0, %v226_v26  }
  0x9a   :  { %220 = vst.msk [vmem:[#allocation0 + $0x83] ss:$8 sm:$0xf] %vm3_vm0, %v217_v27   ;;  %222 = vst.msk [vmem:[#allocation0 + $0x83] ss:$8 sm:$0xf0] %vm3_vm0, %v217_v27  }
  0x9c   :  { %v316_v28 = vld [vmem:[#allocation0 + $0x40] sm:$0xf]  ;;  %v322_v29 = vld [vmem:[#allocation0 + $0x48] sm:$0xf]  ;;  %v328_v30 = vld [vmem:[#allocation0 + $0x50] sm:$0xf]  ;;  %v244_v31 = vpop.permute.xlu1 %243   ;;  %v235_v32 = vpop.permute.xlu0 %234  }
  0x9d   :  { %v334_v33 = vld [vmem:[#allocation0 + $0x58] sm:$0xf]  ;;  %v340_v34 = vld [vmem:[#allocation0 + $0x60] sm:$0xf]  ;;  %v346_v35 = vld [vmem:[#allocation0 + $0x68] sm:$0xf] }
  0x9e   :  { %748 = vst [vmem:[%s1101_s1 + $0x20] sm:$0xf] %v316_v28  ;;  %749 = vst [vmem:[%s1101_s1 + $0x24] sm:$0xf] %v322_v29  ;;  %v352_v36 = vld [vmem:[#allocation0 + $0x70] sm:$0xf] }
  0x9f   :  { %750 = vst [vmem:[%s1101_s1 + $0x28] sm:$0xf] %v328_v30  ;;  %247 = vst.msk [vmem:[#allocation0 + $0x143] ss:$8 sm:$0xf] %vm3_vm0, %v244_v31  }
  0xa0   :  { %249 = vst.msk [vmem:[#allocation0 + $0x143] ss:$8 sm:$0xf0] %vm3_vm0, %v244_v31   ;;  %238 = vst.msk [vmem:[#allocation0 + $0x103] ss:$8 sm:$0xf] %vm3_vm0, %v235_v32   ;;  %v262_v45 = vpop.permute.xlu1 %261   ;;  %v253_v46 = vpop.permute.xlu0 %252  }
  0xa1   :  { %240 = vst.msk [vmem:[#allocation0 + $0x103] ss:$8 sm:$0xf0] %vm3_vm0, %v235_v32   ;;  %v358_v37 = vld [vmem:[#allocation0 + $0x78] sm:$0xf] }
  0xa2   :  { %v271_v38 = vld [vmem:[#allocation0] sm:$0xf]  ;;  %751 = vst [vmem:[%s1101_s1 + $0x2c] sm:$0xf] %v334_v33  ;;  %752 = vst [vmem:[%s1101_s1 + $0x30] sm:$0xf] %v340_v34 }
  0xa3   :  { %753 = vst [vmem:[%s1101_s1 + $0x34] sm:$0xf] %v346_v35  ;;  %v275_v39 = vld [vmem:[#allocation0 + $0x8] sm:$0xf]  ;;  %v280_v40 = vld [vmem:[#allocation0 + $0x10] sm:$0xf] }
  0xa4   :  { %v286_v41 = vld [vmem:[#allocation0 + $0x18] sm:$0xf]  ;;  %754 = vst [vmem:[%s1101_s1 + $0x38] sm:$0xf] %v352_v36  ;;  %755 = vst [vmem:[%s1101_s1 + $0x3c] sm:$0xf] %v358_v37 }
  0xa5   :  { %273 = vst [vmem:[%s1101_s1] sm:$0xf] %v271_v38  ;;  %v292_v42 = vld [vmem:[#allocation0 + $0x20] sm:$0xf]  ;;  %v298_v43 = vld [vmem:[#allocation0 + $0x28] sm:$0xf] }
  0xa6   :  { %v304_v44 = vld [vmem:[#allocation0 + $0x30] sm:$0xf]  ;;  %741 = vst [vmem:[%s1101_s1 + $0x4] sm:$0xf] %v275_v39  ;;  %742 = vst [vmem:[%s1101_s1 + $0x8] sm:$0xf] %v280_v40 }
  0xa7   :  { %743 = vst [vmem:[%s1101_s1 + $0xc] sm:$0xf] %v286_v41  ;;  %v310_v47 = vld [vmem:[#allocation0 + $0x38] sm:$0xf]  ;;  %744 = vst [vmem:[%s1101_s1 + $0x10] sm:$0xf] %v292_v42 }
  0xa8   :  { %745 = vst [vmem:[%s1101_s1 + $0x14] sm:$0xf] %v298_v43  ;;  %746 = vst [vmem:[%s1101_s1 + $0x18] sm:$0xf] %v304_v44  ;;  %v412_v48 = vld [vmem:[#allocation0 + $0xc0] sm:$0xf] }
  0xa9   :  { %v418_v49 = vld [vmem:[#allocation0 + $0xc8] sm:$0xf]  ;;  %265 = vst.msk [vmem:[#allocation0 + $0x1c3] ss:$8 sm:$0xf] %vm3_vm0, %v262_v45  }
  0xaa   :  { %267 = vst.msk [vmem:[#allocation0 + $0x1c3] ss:$8 sm:$0xf0] %vm3_vm0, %v262_v45   ;;  %256 = vst.msk [vmem:[#allocation0 + $0x183] ss:$8 sm:$0xf] %vm3_vm0, %v253_v46  }
  0xab   :  { %258 = vst.msk [vmem:[#allocation0 + $0x183] ss:$8 sm:$0xf0] %vm3_vm0, %v253_v46   ;;  %747 = vst [vmem:[%s1101_s1 + $0x1c] sm:$0xf] %v310_v47 }
  0xac   :  { %v424_v50 = vld [vmem:[#allocation0 + $0xd0] sm:$0xf]  ;;  %v430_v51 = vld [vmem:[#allocation0 + $0xd8] sm:$0xf]  ;;  %v436_v52 = vld [vmem:[#allocation0 + $0xe0] sm:$0xf] }
  0xad   :  { %764 = vst [vmem:[%s1101_s1 + $0x60] sm:$0xf] %v412_v48  ;;  %765 = vst [vmem:[%s1101_s1 + $0x64] sm:$0xf] %v418_v49  ;;  %v442_v53 = vld [vmem:[#allocation0 + $0xe8] sm:$0xf] }
  0xae   :  { %v448_v54 = vld [vmem:[#allocation0 + $0xf0] sm:$0xf]  ;;  %v454_v55 = vld [vmem:[#allocation0 + $0xf8] sm:$0xf]  ;;  %766 = vst [vmem:[%s1101_s1 + $0x68] sm:$0xf] %v424_v50 }
  0xaf   :  { %767 = vst [vmem:[%s1101_s1 + $0x6c] sm:$0xf] %v430_v51  ;;  %768 = vst [vmem:[%s1101_s1 + $0x70] sm:$0xf] %v436_v52  ;;  %v364_v56 = vld [vmem:[#allocation0 + $0x80] sm:$0xf] }
  0xb0   :  { %v370_v57 = vld [vmem:[#allocation0 + $0x88] sm:$0xf]  ;;  %v376_v58 = vld [vmem:[#allocation0 + $0x90] sm:$0xf]  ;;  %769 = vst [vmem:[%s1101_s1 + $0x74] sm:$0xf] %v442_v53 }
  0xb1   :  { %770 = vst [vmem:[%s1101_s1 + $0x78] sm:$0xf] %v448_v54  ;;  %771 = vst [vmem:[%s1101_s1 + $0x7c] sm:$0xf] %v454_v55  ;;  %v382_v59 = vld [vmem:[#allocation0 + $0x98] sm:$0xf] }
  0xb2   :  { %v388_v60 = vld [vmem:[#allocation0 + $0xa0] sm:$0xf]  ;;  %v394_v61 = vld [vmem:[#allocation0 + $0xa8] sm:$0xf]  ;;  %756 = vst [vmem:[%s1101_s1 + $0x40] sm:$0xf] %v364_v56 }
  0xb3   :  { %757 = vst [vmem:[%s1101_s1 + $0x44] sm:$0xf] %v370_v57  ;;  %758 = vst [vmem:[%s1101_s1 + $0x48] sm:$0xf] %v376_v58  ;;  %v400_v62 = vld [vmem:[#allocation0 + $0xb0] sm:$0xf] }
  0xb4   :  { %v406_v63 = vld [vmem:[#allocation0 + $0xb8] sm:$0xf]  ;;  %v508_v0 = vld [vmem:[#allocation0 + $0x140] sm:$0xf]  ;;  %759 = vst [vmem:[%s1101_s1 + $0x4c] sm:$0xf] %v382_v59 }
  0xb5   :  { %760 = vst [vmem:[%s1101_s1 + $0x50] sm:$0xf] %v388_v60  ;;  %761 = vst [vmem:[%s1101_s1 + $0x54] sm:$0xf] %v394_v61  ;;  %v514_v1 = vld [vmem:[#allocation0 + $0x148] sm:$0xf] }
  0xb6   :  { %780 = vst [vmem:[%s1101_s1 + $0xa0] sm:$0xf] %v508_v0  ;;  %v520_v2 = vld [vmem:[#allocation0 + $0x150] sm:$0xf]  ;;  %v526_v3 = vld [vmem:[#allocation0 + $0x158] sm:$0xf] }
  0xb7   :  { %762 = vst [vmem:[%s1101_s1 + $0x58] sm:$0xf] %v400_v62  ;;  %763 = vst [vmem:[%s1101_s1 + $0x5c] sm:$0xf] %v406_v63  ;;  %v532_v4 = vld [vmem:[#allocation0 + $0x160] sm:$0xf] }
  0xb8   :  { %781 = vst [vmem:[%s1101_s1 + $0xa4] sm:$0xf] %v514_v1  ;;  %782 = vst [vmem:[%s1101_s1 + $0xa8] sm:$0xf] %v520_v2  ;;  %v538_v5 = vld [vmem:[#allocation0 + $0x168] sm:$0xf] }
  0xb9   :  { %783 = vst [vmem:[%s1101_s1 + $0xac] sm:$0xf] %v526_v3  ;;  %v544_v6 = vld [vmem:[#allocation0 + $0x170] sm:$0xf]  ;;  %784 = vst [vmem:[%s1101_s1 + $0xb0] sm:$0xf] %v532_v4 }
  0xba   :  { %785 = vst [vmem:[%s1101_s1 + $0xb4] sm:$0xf] %v538_v5  ;;  %786 = vst [vmem:[%s1101_s1 + $0xb8] sm:$0xf] %v544_v6  ;;  %v550_v7 = vld [vmem:[#allocation0 + $0x178] sm:$0xf] }
  0xbb   :  { %v460_v8 = vld [vmem:[#allocation0 + $0x100] sm:$0xf]  ;;  %v466_v9 = vld [vmem:[#allocation0 + $0x108] sm:$0xf]  ;;  %787 = vst [vmem:[%s1101_s1 + $0xbc] sm:$0xf] %v550_v7 }
  0xbc   :  { %772 = vst [vmem:[%s1101_s1 + $0x80] sm:$0xf] %v460_v8  ;;  %773 = vst [vmem:[%s1101_s1 + $0x84] sm:$0xf] %v466_v9  ;;  %v472_v10 = vld [vmem:[#allocation0 + $0x110] sm:$0xf] }
  0xbd   :  { %v478_v11 = vld [vmem:[#allocation0 + $0x118] sm:$0xf]  ;;  %v484_v12 = vld [vmem:[#allocation0 + $0x120] sm:$0xf]  ;;  %774 = vst [vmem:[%s1101_s1 + $0x88] sm:$0xf] %v472_v10 }
  0xbe   :  { %775 = vst [vmem:[%s1101_s1 + $0x8c] sm:$0xf] %v478_v11  ;;  %776 = vst [vmem:[%s1101_s1 + $0x90] sm:$0xf] %v484_v12  ;;  %v490_v13 = vld [vmem:[#allocation0 + $0x128] sm:$0xf] }
  0xbf   :  { %v496_v14 = vld [vmem:[#allocation0 + $0x130] sm:$0xf]  ;;  %v502_v15 = vld [vmem:[#allocation0 + $0x138] sm:$0xf]  ;;  %777 = vst [vmem:[%s1101_s1 + $0x94] sm:$0xf] %v490_v13 }
  0xc0   :  { %778 = vst [vmem:[%s1101_s1 + $0x98] sm:$0xf] %v496_v14  ;;  %779 = vst [vmem:[%s1101_s1 + $0x9c] sm:$0xf] %v502_v15  ;;  %v604_v16 = vld [vmem:[#allocation0 + $0x1c0] sm:$0xf] }
  0xc1   :  { %v610_v17 = vld [vmem:[#allocation0 + $0x1c8] sm:$0xf]  ;;  %v616_v18 = vld [vmem:[#allocation0 + $0x1d0] sm:$0xf]  ;;  %796 = vst [vmem:[%s1101_s1 + $0xe0] sm:$0xf] %v604_v16 }
  0xc2   :  { %797 = vst [vmem:[%s1101_s1 + $0xe4] sm:$0xf] %v610_v17  ;;  %798 = vst [vmem:[%s1101_s1 + $0xe8] sm:$0xf] %v616_v18  ;;  %v622_v19 = vld [vmem:[#allocation0 + $0x1d8] sm:$0xf] }
  0xc3   :  { %v628_v20 = vld [vmem:[#allocation0 + $0x1e0] sm:$0xf]  ;;  %v634_v21 = vld [vmem:[#allocation0 + $0x1e8] sm:$0xf]  ;;  %799 = vst [vmem:[%s1101_s1 + $0xec] sm:$0xf] %v622_v19 }
  0xc4   :  { %800 = vst [vmem:[%s1101_s1 + $0xf0] sm:$0xf] %v628_v20  ;;  %801 = vst [vmem:[%s1101_s1 + $0xf4] sm:$0xf] %v634_v21  ;;  %v640_v22 = vld [vmem:[#allocation0 + $0x1f0] sm:$0xf] }
  0xc5   :  { %v646_v23 = vld [vmem:[#allocation0 + $0x1f8] sm:$0xf]  ;;  %v556_v24 = vld [vmem:[#allocation0 + $0x180] sm:$0xf]  ;;  %802 = vst [vmem:[%s1101_s1 + $0xf8] sm:$0xf] %v640_v22 }
  0xc6   :  { %803 = vst [vmem:[%s1101_s1 + $0xfc] sm:$0xf] %v646_v23  ;;  %788 = vst [vmem:[%s1101_s1 + $0xc0] sm:$0xf] %v556_v24  ;;  %v562_v25 = vld [vmem:[#allocation0 + $0x188] sm:$0xf] }
  0xc7   :  { %v568_v26 = vld [vmem:[#allocation0 + $0x190] sm:$0xf]  ;;  %v574_v27 = vld [vmem:[#allocation0 + $0x198] sm:$0xf]  ;;  %789 = vst [vmem:[%s1101_s1 + $0xc4] sm:$0xf] %v562_v25 }
  0xc8   :  { %790 = vst [vmem:[%s1101_s1 + $0xc8] sm:$0xf] %v568_v26  ;;  %791 = vst [vmem:[%s1101_s1 + $0xcc] sm:$0xf] %v574_v27  ;;  %v580_v28 = vld [vmem:[#allocation0 + $0x1a0] sm:$0xf] }
  0xc9   :  { %v586_v29 = vld [vmem:[#allocation0 + $0x1a8] sm:$0xf]  ;;  %v592_v30 = vld [vmem:[#allocation0 + $0x1b0] sm:$0xf]  ;;  %792 = vst [vmem:[%s1101_s1 + $0xd0] sm:$0xf] %v580_v28 }
  0xca   :  { %793 = vst [vmem:[%s1101_s1 + $0xd4] sm:$0xf] %v586_v29  ;;  %794 = vst [vmem:[%s1101_s1 + $0xd8] sm:$0xf] %v592_v30  ;;  %v598_v31 = vld [vmem:[#allocation0 + $0x1b8] sm:$0xf] }
  0xcb   :  { %795 = vst [vmem:[%s1101_s1 + $0xdc] sm:$0xf] %v598_v31 }

// kernel: squeeze.3
= control target key start
LH: loop header
LB: loop body
LE: loop exit
PB: predicated region body
PF: predicated region fallthrough
CT: control target
= control target key end

     0   :  { %2 = vsyncpa [#allocation1], 0  ;;  %s815_s6 = smov [#allocation0]   ;;  %s1097_s0 = inlined_call_operand.hbm [shape: f32[1,4,16,16], index: 0, kind: input, shape index: {}]   ;;  %s1098_s1 = inlined_call_operand.vmem [shape: f32[4,4,4,4,4], index: 1, kind: output, shape index: {}]  }
   0x1   :  { %s7_s7 = sshll.u32 %s815_s6, 4  ;;  %s791_s10 = scalar_lea.hbm %s1097_s0, 1024  ;;  %s8_s7 = int_to_ptr.vmem [resolvable:$true] %s7_s7 }
   0x2   :  { %p792_p0 = scmp.ne.s32.totalorder %s1097_s0, %s791_s10  ;;  %p795_p1 = scmp.lt.u32.totalorder %s791_s10, %s1097_s0 }
   0x4   :  { %p797_p2 = pnand %p795_p1, %p792_p0 }
   0x6   :  { %800 = shalt.err (!%p797_p2)
}
   0x7   :  { %s801_s15 = scalar_lea.vmem %s8_s7, 1024  ;;  %p806_p4 = scmp.lt.s32.totalorder %s8_s7, %s8_s7 }
   0x8   :  { %p802_p3 = scmp.ne.s32.totalorder %s8_s7, %s801_s15  ;;  %p807_p5 = scmp.lt.s32.totalorder %s801_s15, %s801_s15 }
   0xa   :  { %p808_p6 = por %p807_p5, %p806_p4 }
   0xc   :  { %p809_p7 = pnand %p808_p6, %p802_p3 }
   0xe   :  { %812 = shalt.err (!%p809_p7)
}
   0xf   :  { %10 = dma.hbm_to_vmem [thread:$0]  %s1097_s0, 1024, %s8_s7, [#allocation1]  }
  0x10   :  { %813 = dma.done.wait [#allocation1], 1024  }
  0x11   :  { %814 = vsyncadd [#allocation1], 4294966272  ;;  %v83_v0 = vld [vmem:[#allocation0 + $0x10] sm:$0xff]   ;;  %v65_v1 = vld [vmem:[#allocation0] sm:$0xff]   ;;  %vm13_vm0 = vcmask 31744   ;;  %s816_s0 = smov 124  }
  0x12   :  { %v92_v2 = vld [vmem:[#allocation0 + $0x18] sm:$0xff]   ;;  %84 = vrot.lane.b32.xlu1 %v83_v0, %s816_s0  ;;  %66 = vrot.lane.b32.xlu0 %v65_v1, %s816_s0  ;;  %v74_v3 = vld [vmem:[#allocation0 + $0x8] sm:$0xff]   ;;  %v101_v5 = vld [vmem:[#allocation0 + $0x20] sm:$0xff]   ;;  %14 = vst.msk [vmem:[#allocation2] ss:$8 sm:$0xf] %vm13_vm0, %v65_v1  }
  0x13   :  { %v110_v4 = vld [vmem:[#allocation0 + $0x28] sm:$0xff]   ;;  %15 = vst.msk [vmem:[#allocation2] ss:$8 sm:$0xf0] %vm13_vm0, %v65_v1   ;;  %v128_v6 = vld [vmem:[#allocation0 + $0x38] sm:$0xff]   ;;  %v119_v7 = vld [vmem:[#allocation0 + $0x30] sm:$0xff]  }
  0x14   :  { %36 = vst.msk [vmem:[#allocation2 + $0xc0] ss:$8 sm:$0xf0] %vm13_vm0, %v92_v2   ;;  %34 = vst.msk [vmem:[#allocation2 + $0xc0] ss:$8 sm:$0xf] %vm13_vm0, %v92_v2  }
  0x15   :  { %27 = vst.msk [vmem:[#allocation2 + $0x80] ss:$8 sm:$0xf] %vm13_vm0, %v83_v0   ;;  %29 = vst.msk [vmem:[#allocation2 + $0x80] ss:$8 sm:$0xf0] %vm13_vm0, %v83_v0  }
  0x16   :  { %20 = vst.msk [vmem:[#allocation2 + $0x40] ss:$8 sm:$0xf] %vm13_vm0, %v74_v3   ;;  %22 = vst.msk [vmem:[#allocation2 + $0x40] ss:$8 sm:$0xf0] %vm13_vm0, %v74_v3   ;;  %93 = vrot.lane.b32.xlu1 %v92_v2, %s816_s0  ;;  %75 = vrot.lane.b32.xlu0 %v74_v3, %s816_s0 }
  0x17   :  { %48 = vst.msk [vmem:[#allocation2 + $0x140] ss:$8 sm:$0xf] %vm13_vm0, %v110_v4   ;;  %50 = vst.msk [vmem:[#allocation2 + $0x140] ss:$8 sm:$0xf0] %vm13_vm0, %v110_v4  }
  0x18   :  { %41 = vst.msk [vmem:[#allocation2 + $0x100] ss:$8 sm:$0xf] %vm13_vm0, %v101_v5   ;;  %43 = vst.msk [vmem:[#allocation2 + $0x100] ss:$8 sm:$0xf0] %vm13_vm0, %v101_v5  }
  0x19   :  { %64 = vst.msk [vmem:[#allocation2 + $0x1c0] ss:$8 sm:$0xf0] %vm13_vm0, %v128_v6   ;;  %62 = vst.msk [vmem:[#allocation2 + $0x1c0] ss:$8 sm:$0xf] %vm13_vm0, %v128_v6  }
  0x1a   :  { %57 = vst.msk [vmem:[#allocation2 + $0x180] ss:$8 sm:$0xf0] %vm13_vm0, %v119_v7   ;;  %55 = vst.msk [vmem:[#allocation2 + $0x180] ss:$8 sm:$0xf] %vm13_vm0, %v119_v7   ;;  %111 = vrot.lane.b32.xlu1 %v110_v4, %s816_s0  ;;  %102 = vrot.lane.b32.xlu0 %v101_v5, %s816_s0 }
  0x1b   :  { %s817_s18 = smov 120   ;;  %s818_s19 = smov 116  }
  0x1e   :  { %129 = vrot.lane.b32.xlu1 %v128_v6, %s816_s0  ;;  %120 = vrot.lane.b32.xlu0 %v119_v7, %s816_s0 }
  0x22   :  { %146 = vrot.lane.b32.xlu1 %v74_v3, %s817_s18  ;;  %137 = vrot.lane.b32.xlu0 %v65_v1, %s817_s18 }
  0x26   :  { %164 = vrot.lane.b32.xlu1 %v92_v2, %s817_s18  ;;  %155 = vrot.lane.b32.xlu0 %v83_v0, %s817_s18 }
  0x2a   :  { %182 = vrot.lane.b32.xlu1 %v110_v4, %s817_s18  ;;  %173 = vrot.lane.b32.xlu0 %v101_v5, %s817_s18 }
  0x2e   :  { %200 = vrot.lane.b32.xlu1 %v128_v6, %s817_s18  ;;  %191 = vrot.lane.b32.xlu0 %v119_v7, %s817_s18 }
  0x32   :  { %217 = vrot.lane.b32.xlu1 %v74_v3, %s818_s19  ;;  %208 = vrot.lane.b32.xlu0 %v65_v1, %s818_s19 }
  0x36   :  { %235 = vrot.lane.b32.xlu1 %v92_v2, %s818_s19  ;;  %226 = vrot.lane.b32.xlu0 %v83_v0, %s818_s19 }
  0x3a   :  { %253 = vrot.lane.b32.xlu1 %v110_v4, %s818_s19  ;;  %244 = vrot.lane.b32.xlu0 %v101_v5, %s818_s19 }
  0x3e   :  { %271 = vrot.lane.b32.xlu1 %v128_v6, %s818_s19  ;;  %262 = vrot.lane.b32.xlu0 %v119_v7, %s818_s19 }
  0x84   :  { %v85_v8 = vpop.permute.xlu1 %84   ;;  %v67_v9 = vpop.permute.xlu0 %66  }
  0x85   :  { %88 = vst.msk [vmem:[#allocation2 + $0x81] ss:$8 sm:$0xf] %vm13_vm0, %v85_v8   ;;  %90 = vst.msk [vmem:[#allocation2 + $0x81] ss:$8 sm:$0xf0] %vm13_vm0, %v85_v8  }
  0x86   :  { %70 = vst.msk [vmem:[#allocation2 + $0x1] ss:$8 sm:$0xf] %vm13_vm0, %v67_v9   ;;  %72 = vst.msk [vmem:[#allocation2 + $0x1] ss:$8 sm:$0xf0] %vm13_vm0, %v67_v9  }
  0x88   :  { %v94_v10 = vpop.permute.xlu1 %93   ;;  %v76_v11 = vpop.permute.xlu0 %75  }
  0x89   :  { %97 = vst.msk [vmem:[#allocation2 + $0xc1] ss:$8 sm:$0xf] %vm13_vm0, %v94_v10   ;;  %99 = vst.msk [vmem:[#allocation2 + $0xc1] ss:$8 sm:$0xf0] %vm13_vm0, %v94_v10  }
  0x8a   :  { %79 = vst.msk [vmem:[#allocation2 + $0x41] ss:$8 sm:$0xf] %vm13_vm0, %v76_v11   ;;  %81 = vst.msk [vmem:[#allocation2 + $0x41] ss:$8 sm:$0xf0] %vm13_vm0, %v76_v11  }
  0x8c   :  { %v112_v12 = vpop.permute.xlu1 %111   ;;  %v103_v13 = vpop.permute.xlu0 %102  }
  0x8d   :  { %115 = vst.msk [vmem:[#allocation2 + $0x141] ss:$8 sm:$0xf] %vm13_vm0, %v112_v12   ;;  %117 = vst.msk [vmem:[#allocation2 + $0x141] ss:$8 sm:$0xf0] %vm13_vm0, %v112_v12  }
  0x8e   :  { %106 = vst.msk [vmem:[#allocation2 + $0x101] ss:$8 sm:$0xf] %vm13_vm0, %v103_v13   ;;  %108 = vst.msk [vmem:[#allocation2 + $0x101] ss:$8 sm:$0xf0] %vm13_vm0, %v103_v13  }
  0x90   :  { %v130_v14 = vpop.permute.xlu1 %129   ;;  %v121_v15 = vpop.permute.xlu0 %120  }
  0x91   :  { %133 = vst.msk [vmem:[#allocation2 + $0x1c1] ss:$8 sm:$0xf] %vm13_vm0, %v130_v14   ;;  %135 = vst.msk [vmem:[#allocation2 + $0x1c1] ss:$8 sm:$0xf0] %vm13_vm0, %v130_v14  }
  0x92   :  { %124 = vst.msk [vmem:[#allocation2 + $0x181] ss:$8 sm:$0xf] %vm13_vm0, %v121_v15   ;;  %126 = vst.msk [vmem:[#allocation2 + $0x181] ss:$8 sm:$0xf0] %vm13_vm0, %v121_v15  }
  0x94   :  { %v147_v16 = vpop.permute.xlu1 %146   ;;  %v138_v17 = vpop.permute.xlu0 %137  }
  0x95   :  { %150 = vst.msk [vmem:[#allocation2 + $0x42] ss:$8 sm:$0xf] %vm13_vm0, %v147_v16   ;;  %152 = vst.msk [vmem:[#allocation2 + $0x42] ss:$8 sm:$0xf0] %vm13_vm0, %v147_v16  }
  0x96   :  { %141 = vst.msk [vmem:[#allocation2 + $0x2] ss:$8 sm:$0xf] %vm13_vm0, %v138_v17   ;;  %143 = vst.msk [vmem:[#allocation2 + $0x2] ss:$8 sm:$0xf0] %vm13_vm0, %v138_v17  }
  0x98   :  { %v165_v18 = vpop.permute.xlu1 %164   ;;  %v156_v19 = vpop.permute.xlu0 %155  }
  0x99   :  { %168 = vst.msk [vmem:[#allocation2 + $0xc2] ss:$8 sm:$0xf] %vm13_vm0, %v165_v18   ;;  %170 = vst.msk [vmem:[#allocation2 + $0xc2] ss:$8 sm:$0xf0] %vm13_vm0, %v165_v18  }
  0x9a   :  { %159 = vst.msk [vmem:[#allocation2 + $0x82] ss:$8 sm:$0xf] %vm13_vm0, %v156_v19   ;;  %161 = vst.msk [vmem:[#allocation2 + $0x82] ss:$8 sm:$0xf0] %vm13_vm0, %v156_v19  }
  0x9c   :  { %v183_v20 = vpop.permute.xlu1 %182   ;;  %v174_v21 = vpop.permute.xlu0 %173  }
  0x9d   :  { %186 = vst.msk [vmem:[#allocation2 + $0x142] ss:$8 sm:$0xf] %vm13_vm0, %v183_v20   ;;  %188 = vst.msk [vmem:[#allocation2 + $0x142] ss:$8 sm:$0xf0] %vm13_vm0, %v183_v20  }
  0x9e   :  { %177 = vst.msk [vmem:[#allocation2 + $0x102] ss:$8 sm:$0xf] %vm13_vm0, %v174_v21   ;;  %179 = vst.msk [vmem:[#allocation2 + $0x102] ss:$8 sm:$0xf0] %vm13_vm0, %v174_v21  }
  0xa0   :  { %v201_v22 = vpop.permute.xlu1 %200   ;;  %v192_v23 = vpop.permute.xlu0 %191  }
  0xa1   :  { %204 = vst.msk [vmem:[#allocation2 + $0x1c2] ss:$8 sm:$0xf] %vm13_vm0, %v201_v22   ;;  %206 = vst.msk [vmem:[#allocation2 + $0x1c2] ss:$8 sm:$0xf0] %vm13_vm0, %v201_v22  }
  0xa2   :  { %195 = vst.msk [vmem:[#allocation2 + $0x182] ss:$8 sm:$0xf] %vm13_vm0, %v192_v23   ;;  %197 = vst.msk [vmem:[#allocation2 + $0x182] ss:$8 sm:$0xf0] %vm13_vm0, %v192_v23  }
  0xa4   :  { %v218_v24 = vpop.permute.xlu1 %217   ;;  %v209_v25 = vpop.permute.xlu0 %208  }
  0xa5   :  { %221 = vst.msk [vmem:[#allocation2 + $0x43] ss:$8 sm:$0xf] %vm13_vm0, %v218_v24   ;;  %223 = vst.msk [vmem:[#allocation2 + $0x43] ss:$8 sm:$0xf0] %vm13_vm0, %v218_v24  }
  0xa6   :  { %212 = vst.msk [vmem:[#allocation2 + $0x3] ss:$8 sm:$0xf] %vm13_vm0, %v209_v25   ;;  %214 = vst.msk [vmem:[#allocation2 + $0x3] ss:$8 sm:$0xf0] %vm13_vm0, %v209_v25  }
  0xa8   :  { %v236_v26 = vpop.permute.xlu1 %235   ;;  %v227_v27 = vpop.permute.xlu0 %226  }
  0xa9   :  { %239 = vst.msk [vmem:[#allocation2 + $0xc3] ss:$8 sm:$0xf] %vm13_vm0, %v236_v26   ;;  %241 = vst.msk [vmem:[#allocation2 + $0xc3] ss:$8 sm:$0xf0] %vm13_vm0, %v236_v26  }
  0xaa   :  { %230 = vst.msk [vmem:[#allocation2 + $0x83] ss:$8 sm:$0xf] %vm13_vm0, %v227_v27   ;;  %232 = vst.msk [vmem:[#allocation2 + $0x83] ss:$8 sm:$0xf0] %vm13_vm0, %v227_v27  }
  0xac   :  { %v326_v28 = vld [vmem:[#allocation2 + $0x40] sm:$0xf]  ;;  %v332_v29 = vld [vmem:[#allocation2 + $0x48] sm:$0xf]  ;;  %v338_v30 = vld [vmem:[#allocation2 + $0x50] sm:$0xf]  ;;  %v254_v31 = vpop.permute.xlu1 %253   ;;  %v245_v32 = vpop.permute.xlu0 %244  }
  0xad   :  { %v344_v33 = vld [vmem:[#allocation2 + $0x58] sm:$0xf]  ;;  %v350_v34 = vld [vmem:[#allocation2 + $0x60] sm:$0xf]  ;;  %v356_v35 = vld [vmem:[#allocation2 + $0x68] sm:$0xf] }
  0xae   :  { %731 = vst [vmem:[%s1098_s1 + $0x20] sm:$0xf] %v326_v28  ;;  %732 = vst [vmem:[%s1098_s1 + $0x24] sm:$0xf] %v332_v29  ;;  %v362_v36 = vld [vmem:[#allocation2 + $0x70] sm:$0xf] }
  0xaf   :  { %733 = vst [vmem:[%s1098_s1 + $0x28] sm:$0xf] %v338_v30  ;;  %257 = vst.msk [vmem:[#allocation2 + $0x143] ss:$8 sm:$0xf] %vm13_vm0, %v254_v31  }
  0xb0   :  { %259 = vst.msk [vmem:[#allocation2 + $0x143] ss:$8 sm:$0xf0] %vm13_vm0, %v254_v31   ;;  %248 = vst.msk [vmem:[#allocation2 + $0x103] ss:$8 sm:$0xf] %vm13_vm0, %v245_v32   ;;  %v272_v45 = vpop.permute.xlu1 %271   ;;  %v263_v46 = vpop.permute.xlu0 %262  }
  0xb1   :  { %250 = vst.msk [vmem:[#allocation2 + $0x103] ss:$8 sm:$0xf0] %vm13_vm0, %v245_v32   ;;  %v368_v37 = vld [vmem:[#allocation2 + $0x78] sm:$0xf] }
  0xb2   :  { %v302_v38 = vld [vmem:[#allocation2 + $0x20] sm:$0xf]  ;;  %734 = vst [vmem:[%s1098_s1 + $0x2c] sm:$0xf] %v344_v33  ;;  %735 = vst [vmem:[%s1098_s1 + $0x30] sm:$0xf] %v350_v34 }
  0xb3   :  { %736 = vst [vmem:[%s1098_s1 + $0x34] sm:$0xf] %v356_v35  ;;  %727 = vst [vmem:[%s1098_s1 + $0x10] sm:$0xf] %v302_v38  ;;  %v308_v39 = vld [vmem:[#allocation2 + $0x28] sm:$0xf] }
  0xb4   :  { %v314_v40 = vld [vmem:[#allocation2 + $0x30] sm:$0xf]  ;;  %v320_v41 = vld [vmem:[#allocation2 + $0x38] sm:$0xf]  ;;  %737 = vst [vmem:[%s1098_s1 + $0x38] sm:$0xf] %v362_v36 }
  0xb5   :  { %738 = vst [vmem:[%s1098_s1 + $0x3c] sm:$0xf] %v368_v37  ;;  %728 = vst [vmem:[%s1098_s1 + $0x14] sm:$0xf] %v308_v39  ;;  %v281_v42 = vld [vmem:[#allocation2] sm:$0xf] }
  0xb6   :  { %729 = vst [vmem:[%s1098_s1 + $0x18] sm:$0xf] %v314_v40  ;;  %730 = vst [vmem:[%s1098_s1 + $0x1c] sm:$0xf] %v320_v41  ;;  %v285_v43 = vld [vmem:[#allocation2 + $0x8] sm:$0xf] }
  0xb7   :  { %v290_v44 = vld [vmem:[#allocation2 + $0x10] sm:$0xf]  ;;  %v296_v47 = vld [vmem:[#allocation2 + $0x18] sm:$0xf]  ;;  %v422_v48 = vld [vmem:[#allocation2 + $0xc0] sm:$0xf] }
  0xb8   :  { %v428_v49 = vld [vmem:[#allocation2 + $0xc8] sm:$0xf]  ;;  %283 = vst [vmem:[%s1098_s1] sm:$0xf] %v281_v42  ;;  %724 = vst [vmem:[%s1098_s1 + $0x4] sm:$0xf] %v285_v43 }
  0xb9   :  { %725 = vst [vmem:[%s1098_s1 + $0x8] sm:$0xf] %v290_v44  ;;  %275 = vst.msk [vmem:[#allocation2 + $0x1c3] ss:$8 sm:$0xf] %vm13_vm0, %v272_v45  }
  0xba   :  { %277 = vst.msk [vmem:[#allocation2 + $0x1c3] ss:$8 sm:$0xf0] %vm13_vm0, %v272_v45   ;;  %266 = vst.msk [vmem:[#allocation2 + $0x183] ss:$8 sm:$0xf] %vm13_vm0, %v263_v46  }
  0xbb   :  { %268 = vst.msk [vmem:[#allocation2 + $0x183] ss:$8 sm:$0xf0] %vm13_vm0, %v263_v46   ;;  %747 = vst [vmem:[%s1098_s1 + $0x60] sm:$0xf] %v422_v48 }
  0xbc   :  { %748 = vst [vmem:[%s1098_s1 + $0x64] sm:$0xf] %v428_v49  ;;  %v434_v50 = vld [vmem:[#allocation2 + $0xd0] sm:$0xf]  ;;  %v440_v51 = vld [vmem:[#allocation2 + $0xd8] sm:$0xf] }
  0xbd   :  { %726 = vst [vmem:[%s1098_s1 + $0xc] sm:$0xf] %v296_v47  ;;  %v446_v52 = vld [vmem:[#allocation2 + $0xe0] sm:$0xf]  ;;  %749 = vst [vmem:[%s1098_s1 + $0x68] sm:$0xf] %v434_v50 }
  0xbe   :  { %750 = vst [vmem:[%s1098_s1 + $0x6c] sm:$0xf] %v440_v51  ;;  %v452_v53 = vld [vmem:[#allocation2 + $0xe8] sm:$0xf]  ;;  %v458_v54 = vld [vmem:[#allocation2 + $0xf0] sm:$0xf] }
  0xbf   :  { %v464_v55 = vld [vmem:[#allocation2 + $0xf8] sm:$0xf]  ;;  %751 = vst [vmem:[%s1098_s1 + $0x70] sm:$0xf] %v446_v52  ;;  %v374_v56 = vld [vmem:[#allocation2 + $0x80] sm:$0xf] }
  0xc0   :  { %v380_v57 = vld [vmem:[#allocation2 + $0x88] sm:$0xf]  ;;  %v386_v58 = vld [vmem:[#allocation2 + $0x90] sm:$0xf]  ;;  %752 = vst [vmem:[%s1098_s1 + $0x74] sm:$0xf] %v452_v53 }
  0xc1   :  { %753 = vst [vmem:[%s1098_s1 + $0x78] sm:$0xf] %v458_v54  ;;  %754 = vst [vmem:[%s1098_s1 + $0x7c] sm:$0xf] %v464_v55  ;;  %v392_v59 = vld [vmem:[#allocation2 + $0x98] sm:$0xf] }
  0xc2   :  { %739 = vst [vmem:[%s1098_s1 + $0x40] sm:$0xf] %v374_v56  ;;  %740 = vst [vmem:[%s1098_s1 + $0x44] sm:$0xf] %v380_v57  ;;  %v398_v60 = vld [vmem:[#allocation2 + $0xa0] sm:$0xf] }
  0xc3   :  { %741 = vst [vmem:[%s1098_s1 + $0x48] sm:$0xf] %v386_v58  ;;  %v404_v61 = vld [vmem:[#allocation2 + $0xa8] sm:$0xf]  ;;  %742 = vst [vmem:[%s1098_s1 + $0x4c] sm:$0xf] %v392_v59 }
  0xc4   :  { %743 = vst [vmem:[%s1098_s1 + $0x50] sm:$0xf] %v398_v60  ;;  %744 = vst [vmem:[%s1098_s1 + $0x54] sm:$0xf] %v404_v61  ;;  %v410_v62 = vld [vmem:[#allocation2 + $0xb0] sm:$0xf] }
  0xc5   :  { %v416_v63 = vld [vmem:[#allocation2 + $0xb8] sm:$0xf]  ;;  %v542_v0 = vld [vmem:[#allocation2 + $0x160] sm:$0xf]  ;;  %745 = vst [vmem:[%s1098_s1 + $0x58] sm:$0xf] %v410_v62 }
  0xc6   :  { %746 = vst [vmem:[%s1098_s1 + $0x5c] sm:$0xf] %v416_v63  ;;  %767 = vst [vmem:[%s1098_s1 + $0xb0] sm:$0xf] %v542_v0  ;;  %v548_v1 = vld [vmem:[#allocation2 + $0x168] sm:$0xf] }
  0xc7   :  { %v554_v2 = vld [vmem:[#allocation2 + $0x170] sm:$0xf]  ;;  %v560_v3 = vld [vmem:[#allocation2 + $0x178] sm:$0xf]  ;;  %768 = vst [vmem:[%s1098_s1 + $0xb4] sm:$0xf] %v548_v1 }
  0xc8   :  { %769 = vst [vmem:[%s1098_s1 + $0xb8] sm:$0xf] %v554_v2  ;;  %770 = vst [vmem:[%s1098_s1 + $0xbc] sm:$0xf] %v560_v3  ;;  %v518_v4 = vld [vmem:[#allocation2 + $0x140] sm:$0xf] }
  0xc9   :  { %v524_v5 = vld [vmem:[#allocation2 + $0x148] sm:$0xf]  ;;  %v530_v6 = vld [vmem:[#allocation2 + $0x150] sm:$0xf]  ;;  %v536_v7 = vld [vmem:[#allocation2 + $0x158] sm:$0xf] }
  0xca   :  { %v470_v8 = vld [vmem:[#allocation2 + $0x100] sm:$0xf]  ;;  %v476_v9 = vld [vmem:[#allocation2 + $0x108] sm:$0xf]  ;;  %763 = vst [vmem:[%s1098_s1 + $0xa0] sm:$0xf] %v518_v4 }
  0xcb   :  { %764 = vst [vmem:[%s1098_s1 + $0xa4] sm:$0xf] %v524_v5  ;;  %765 = vst [vmem:[%s1098_s1 + $0xa8] sm:$0xf] %v530_v6  ;;  %v482_v10 = vld [vmem:[#allocation2 + $0x110] sm:$0xf] }
  0xcc   :  { %v488_v11 = vld [vmem:[#allocation2 + $0x118] sm:$0xf]  ;;  %v494_v12 = vld [vmem:[#allocation2 + $0x120] sm:$0xf]  ;;  %766 = vst [vmem:[%s1098_s1 + $0xac] sm:$0xf] %v536_v7 }
  0xcd   :  { %755 = vst [vmem:[%s1098_s1 + $0x80] sm:$0xf] %v470_v8  ;;  %756 = vst [vmem:[%s1098_s1 + $0x84] sm:$0xf] %v476_v9  ;;  %v500_v13 = vld [vmem:[#allocation2 + $0x128] sm:$0xf] }
  0xce   :  { %v506_v14 = vld [vmem:[#allocation2 + $0x130] sm:$0xf]  ;;  %v512_v15 = vld [vmem:[#allocation2 + $0x138] sm:$0xf]  ;;  %757 = vst [vmem:[%s1098_s1 + $0x88] sm:$0xf] %v482_v10 }
  0xcf   :  { %758 = vst [vmem:[%s1098_s1 + $0x8c] sm:$0xf] %v488_v11  ;;  %759 = vst [vmem:[%s1098_s1 + $0x90] sm:$0xf] %v494_v12  ;;  %v614_v16 = vld [vmem:[#allocation2 + $0x1c0] sm:$0xf] }
  0xd0   :  { %v620_v17 = vld [vmem:[#allocation2 + $0x1c8] sm:$0xf]  ;;  %v626_v18 = vld [vmem:[#allocation2 + $0x1d0] sm:$0xf]  ;;  %760 = vst [vmem:[%s1098_s1 + $0x94] sm:$0xf] %v500_v13 }
  0xd1   :  { %761 = vst [vmem:[%s1098_s1 + $0x98] sm:$0xf] %v506_v14  ;;  %762 = vst [vmem:[%s1098_s1 + $0x9c] sm:$0xf] %v512_v15  ;;  %v632_v19 = vld [vmem:[#allocation2 + $0x1d8] sm:$0xf] }
  0xd2   :  { %779 = vst [vmem:[%s1098_s1 + $0xe0] sm:$0xf] %v614_v16  ;;  %780 = vst [vmem:[%s1098_s1 + $0xe4] sm:$0xf] %v620_v17  ;;  %v638_v20 = vld [vmem:[#allocation2 + $0x1e0] sm:$0xf] }
  0xd3   :  { %781 = vst [vmem:[%s1098_s1 + $0xe8] sm:$0xf] %v626_v18  ;;  %v644_v21 = vld [vmem:[#allocation2 + $0x1e8] sm:$0xf]  ;;  %782 = vst [vmem:[%s1098_s1 + $0xec] sm:$0xf] %v632_v19 }
  0xd4   :  { %v650_v22 = vld [vmem:[#allocation2 + $0x1f0] sm:$0xf]  ;;  %v656_v23 = vld [vmem:[#allocation2 + $0x1f8] sm:$0xf]  ;;  %v566_v24 = vld [vmem:[#allocation2 + $0x180] sm:$0xf] }
  0xd5   :  { %783 = vst [vmem:[%s1098_s1 + $0xf0] sm:$0xf] %v638_v20  ;;  %784 = vst [vmem:[%s1098_s1 + $0xf4] sm:$0xf] %v644_v21  ;;  %v572_v25 = vld [vmem:[#allocation2 + $0x188] sm:$0xf] }
  0xd6   :  { %771 = vst [vmem:[%s1098_s1 + $0xc0] sm:$0xf] %v566_v24  ;;  %v578_v26 = vld [vmem:[#allocation2 + $0x190] sm:$0xf]  ;;  %v584_v27 = vld [vmem:[#allocation2 + $0x198] sm:$0xf] }
  0xd7   :  { %785 = vst [vmem:[%s1098_s1 + $0xf8] sm:$0xf] %v650_v22  ;;  %786 = vst [vmem:[%s1098_s1 + $0xfc] sm:$0xf] %v656_v23  ;;  %v590_v28 = vld [vmem:[#allocation2 + $0x1a0] sm:$0xf] }
  0xd8   :  { %772 = vst [vmem:[%s1098_s1 + $0xc4] sm:$0xf] %v572_v25  ;;  %773 = vst [vmem:[%s1098_s1 + $0xc8] sm:$0xf] %v578_v26  ;;  %v596_v29 = vld [vmem:[#allocation2 + $0x1a8] sm:$0xf] }
  0xd9   :  { %774 = vst [vmem:[%s1098_s1 + $0xcc] sm:$0xf] %v584_v27  ;;  %v602_v30 = vld [vmem:[#allocation2 + $0x1b0] sm:$0xf]  ;;  %775 = vst [vmem:[%s1098_s1 + $0xd0] sm:$0xf] %v590_v28 }
  0xda   :  { %776 = vst [vmem:[%s1098_s1 + $0xd4] sm:$0xf] %v596_v29  ;;  %777 = vst [vmem:[%s1098_s1 + $0xd8] sm:$0xf] %v602_v30  ;;  %v608_v31 = vld [vmem:[#allocation2 + $0x1b8] sm:$0xf] }
  0xdb   :  { %778 = vst [vmem:[%s1098_s1 + $0xdc] sm:$0xf] %v608_v31 }
  0xdc   :  { %661 = vsyncpa [#allocation1], 1 }

// kernel: _baseline_compute.1
= control target key start
LH: loop header
LB: loop body
LE: loop exit
PB: predicated region body
PF: predicated region fallthrough
CT: control target
= control target key end

     0   :  { %vm34_vm0 = vcmask 523264   ;;  %s440_s0 = inlined_call_operand.vmem [shape: f32[32,64], index: 0, kind: input, shape index: {}]   ;;  %s441_s1 = inlined_call_operand.vmem [shape: f32[64,32], index: 1, kind: input, shape index: {}]   ;;  %s442_s2 = inlined_call_operand.vmem [shape: f32[1,32], index: 2, kind: input, shape index: {}]   ;;  %s443_s3 = inlined_call_operand.hbm [shape: f32[1,16], index: 3, kind: output, shape index: {}]  }
   0x1   :  { %v19_v0 = vld [vmem:[%s441_s1] sm:$0xff]  ;;  %v20_v1 = vld [vmem:[%s441_s1 + $0x8] sm:$0xff]  ;;  %v21_v2 = vld [vmem:[%s441_s1 + $0x10] sm:$0xff] }
   0x2   :  { %v301_v3 = vpack.c.bf16 %v20_v1, %v19_v0  ;;  %v22_v4 = vld [vmem:[%s441_s1 + $0x18] sm:$0xff]  ;;  %v23_v6 = vld [vmem:[%s441_s1 + $0x20] sm:$0xff]  ;;  %v24_v7 = vld [vmem:[%s441_s1 + $0x28] sm:$0xff] }
   0x3   :  { %v305_v5 = vpack.c.bf16 %v22_v4, %v21_v2  ;;  %v15_v8 = vld [vmem:[%s440_s0] sm:$0xff] }
   0x4   :  { %302 = vmatprep.subr.bf16.mxu0 %v301_v3  ;;  %288 = vmatprep.mubr.msk.f32.mxu0 %vm34_vm0, %v15_v8 }
   0x5   :  { %304 = vmatpush3.bf16.msra.mxu0 %v301_v3 }
   0x6   :  { %8 = vsyncpa [#allocation3], 0  ;;  %306 = vmatprep.subr.bf16.mxu0 %v305_v5  ;;  %v309_v9 = vpack.c.bf16 %v24_v7, %v23_v6  ;;  %v25_v10 = vld [vmem:[%s441_s1 + $0x30] sm:$0xff]  ;;  %v26_v11 = vld [vmem:[%s441_s1 + $0x38] sm:$0xff]  ;;  %vm134_vm1 = vcmask 261120   ;;  %v355_v30 = vmov 0.0|0.0  }
   0x7   :  { %v313_v12 = vpack.c.bf16 %v26_v11, %v25_v10  ;;  %v16_v13 = vld [vmem:[%s440_s0 + $0x8] sm:$0xff]  ;;  %v17_v14 = vld [vmem:[%s440_s0 + $0x10] sm:$0xff]  ;;  %v18_v15 = vld [vmem:[%s440_s0 + $0x18] sm:$0xff]  ;;  %317 = vmatprep.subr.bf16.mxu1 %v355_v30  ;;  %vm356_vm2 = vmmov 0   ;;  %v357_v31 = vmov 0.0   ;;  %s358_s0 = smov [#allocation2]  }
   0x8   :  { %v249_v16 = vld [vmem:[%s442_s2] ss:$0 sm:$0xff]  ;;  %298 = vmatprep.mubr.msk.f32.mxu1 %vm356_vm2, %v357_v31  ;;  %vm319_vm3 = vmpackc.low %vm134_vm1, %vm134_vm1  ;;  %s241_s2 = sshll.u32 %s358_s0, 4  ;;  %vm233_vm4 = vcmask 122880   ;;  %s242_s2 = int_to_ptr.vmem [resolvable:$true] %s241_s2 }
   0x9   :  { %308 = vmatpush3.bf16.msra.mxu0 %v305_v5  ;;  %s331_s10 = scalar_lea.vmem %s242_s2, 16  ;;  %s335_s11 = scalar_lea.vmem %s242_s2, 32 }
   0xa   :  { %310 = vmatprep.subr.bf16.mxu0 %v309_v9  ;;  %p332_p0 = scmp.ne.s32.totalorder %s242_s2, %s331_s10  ;;  %p336_p1 = scmp.lt.s32.totalorder %s242_s2, %s242_s2 }
   0xb   :  { %p337_p2 = scmp.lt.s32.totalorder %s335_s11, %s331_s10 }
   0xd   :  { %312 = vmatpush3.bf16.msra.mxu0 %v309_v9  ;;  %p338_p3 = por %p337_p2, %p336_p1 }
   0xe   :  { %314 = vmatprep.subr.bf16.mxu0 %v313_v12 }
   0xf   :  { %p339_p4 = pnand %p338_p3, %p332_p0 }
  0x11   :  { %316 = vmatpush3.bf16.msra.mxu0 %v313_v12 }
  0x14   :  { %289 = vmatmul.mubr.msk.f32.vlgmr.msra.gmra.mrb[0].mxu0 %vm34_vm0, %v16_v13 }
  0x15   :  { %291 = vmatprep.mubr.msk.f32.mxu0 %vm34_vm0, %v17_v14 }
  0x18   :  { %292 = vmatmul.mubr.msk.f32.gmra.mrb[2].mxu0 %vm34_vm0, %v18_v15 }
  0xe7   :  { %v290_v17 = vpop.f32.mrb[0].mxu0 }
  0xe8   :  { %v118_v18 = vadd.f32 %v290_v17, %v249_v16  ;;  %v113_v19 = vpop.f32.mrb[1].mxu0 }
  0xea   :  { %v131_v20 = vmul.f32 %v118_v18, %v118_v18 }
  0xeb   :  { %v293_v21 = vpop.f32.mrb[2].mxu0 }
  0xec   :  { %v122_v22 = vpop.f32.mrb[3].mxu0  ;;  %v135_v23 = vsel %vm134_vm1, %v131_v20, 0.0  ;;  %v128_v24 = vadd.f32 %v293_v21, %v249_v16 }
  0xed   :  { %v123_v25 = vadd.f32 %v249_v16, %v122_v22  ;;  %136 = vadd.xlane.f32.xlu1 %v135_v23 }
  0xee   :  { %v133_v28 = vmul.f32 %v128_v24, %v128_v24 }
  0xef   :  { %v132_v26 = vmul.f32 %v123_v25, %v123_v25 }
  0xf0   :  { %v141_v29 = vsel %vm134_vm1, %v133_v28, 0.0 }
  0xf1   :  { %v138_v27 = vsel %vm134_vm1, %v132_v26, 0.0 }
  0xf2   :  { %139 = vadd.xlane.f32.xlu0 %v138_v27 }
  0xf6   :  { %142 = vadd.xlane.f32.xlu0 %v141_v29 }
 0x17a   :  { %v137_v34 = vpop.xlane.xlu1 %136 }
 0x17b   :  { %v144_v37 = vadd.f32 1e-12, %v137_v34 }
 0x17f   :  { %v140_v32 = vpop.xlane.xlu0 %139 }
 0x180   :  { %v145_v33 = vadd.f32 1e-12, %v140_v32 }
 0x182   :  { %325 = vrsqrt.f32 %v145_v33 }
 0x183   :  { %v143_v35 = vpop.xlane.xlu0 %142 }
 0x184   :  { %v146_v36 = vadd.f32 1e-12, %v143_v35 }
 0x186   :  { %327 = vrsqrt.f32 %v146_v36 }
 0x187   :  { %329 = vrsqrt.f32 %v144_v37 }
 0x18c   :  { %v326_v38 = vpop.eup %325 }
 0x18d   :  { %v151_v40 = vmul.f32 %v326_v38, %v123_v25 }
 0x190   :  { %v328_v39 = vpop.eup %327 }
 0x191   :  { %v152_v41 = vmul.f32 %v328_v39, %v128_v24  ;;  %v330_v42 = vpop.eup %329 }
 0x192   :  { %v150_v44 = vmul.f32 %v330_v42, %v118_v18 }
 0x193   :  { %v318_v43 = vpack.c.bf16 %v152_v41, %v151_v40 }
 0x194   :  { %v154_v45 = vrot.slane %v150_v44, 7 }
 0x195   :  { %320 = vmatpush3.bf16.xpose.msk.msra.mxu1 %vm319_vm3, %v318_v43 }
 0x19c   :  { %299 = vmatmul.mubr.msk.f32.vlgmr.msra.gmra.mrb[0].mxu1 %vm134_vm1, %v154_v45 }
 0x26f   :  { %v229_v46 = vpop.f32.mrb[0].mxu1 }
 0x270   :  { %234 = vst.msk [vmem:[#allocation2] sm:$0x1] %vm233_vm4, %v229_v46  ;;  %v300_v47 = vpop.f32.mrb[1].mxu1 }
 0x271   :  { %342 = shalt.err (!%p339_p4)
}
 0x272   :  { %s343_s14 = scalar_lea.hbm %s443_s3, 16 }
 0x273   :  { %p344_p5 = scmp.ne.s32.totalorder %s443_s3, %s343_s14  ;;  %p347_p6 = scmp.lt.u32.totalorder %s343_s14, %s443_s3 }
 0x275   :  { %p349_p7 = pnand %p347_p6, %p344_p5 }
 0x277   :  { %352 = shalt.err (!%p349_p7)
}
 0x278   :  { %244 = dma.vmem_to_hbm [thread:$0]  %s242_s2, 16, %s443_s3, [#allocation3]  }
 0x279   :  { %353 = dma.done.wait [#allocation3], 16  }
 0x27a   :  { %354 = vsyncadd [#allocation3], 4294967280 }
 0x27b   :  { %248 = vsyncpa [#allocation3], 1 }

</bundles_post_ra>
